<compile_context>
chip_gen: v5e
topology: v5e:2x2
jax: 0.10.0
libtpu: 0.0.40
codegen_flags: <defaults>
</compile_context>

<pallas_src>
import functools

import jax
import jax.numpy as jnp
from jax import lax
from jax.experimental import pallas as pl
from jax.experimental.pallas import tpu as pltpu

FOCAL_GAMMA = 2.0  # ASDLoss passes gamma=2 to FocalLoss (square is hard-coded below)


def _round_up(x, m):
    return ((x + m - 1) // m) * m


def _asd_loss_kernel(cls_ref, labels_ref, alpha_ref, atts_ref, oh_ref,
                     loss_ref, ce_ref, bce_ref, acc_ref,
                     *, n_rows, n_att_elems, tile_n):
    i = pl.program_id(0)

    # ---- init accumulators -------------------------------------------------
    @pl.when(i == 0)
    def _():
        acc_ref[0] = jnp.float32(0.0)   # focal sum
        acc_ref[1] = jnp.float32(0.0)   # bce sum

    # ---- Focal loss (single-label, log-softmax based) ----------------------
    logits = cls_ref[...].astype(jnp.float32)          # (tile_n, C)
    labels = labels_ref[...]                           # (tile_n, 1) int32
    alpha = alpha_ref[...]                             # (1, C) f32

    m = jnp.max(logits, axis=1, keepdims=True)
    shifted = logits - m
    lse = jnp.log(jnp.sum(jnp.exp(shifted), axis=1, keepdims=True))
    log_probs = shifted - lse                          # (tile_n, C)

    # one-hot class mask via iota compare (torch scatter_)
    class_ids = lax.broadcasted_iota(jnp.int32, logits.shape, 1)
    mask = (class_ids == labels).astype(jnp.float32)   # (tile_n, C)

    log_p = jnp.sum(log_probs * mask, axis=1, keepdims=True)   # (tile_n, 1)
    probs = jnp.exp(log_p)                                     # (tile_n, 1)
    alpha_row = jnp.sum(mask * alpha, axis=1, keepdims=True)   # (tile_n, 1)

    one_minus = 1.0 - probs
    batch_loss = -alpha_row * (one_minus * one_minus) * log_p  # gamma == 2

    # mask rows that are padding (ragged last tile)
    row_ids = i * tile_n + lax.broadcasted_iota(jnp.int32, (tile_n, 1), 0)
    valid_rows = (row_ids < n_rows).astype(jnp.float32)
    focal_sum = jnp.sum(batch_loss * valid_rows)

    # ---- BCEWithLogitsLoss (elementwise, layout-agnostic block) -------------
    x = atts_ref[...].astype(jnp.float32)              # (R, L)  (lane-dense if possible)
    y = oh_ref[...].astype(jnp.float32)
    bce_elem = jnp.maximum(x, 0.0) - x * y + jnp.log1p(jnp.exp(-jnp.abs(x)))

    R, L = x.shape
    r_iota = lax.broadcasted_iota(jnp.int32, (R, L), 0)
    l_iota = lax.broadcasted_iota(jnp.int32, (R, L), 1)
    flat_idx = i * (R * L) + r_iota * L + l_iota       # index into row-major (N, A)
    valid_elems = (flat_idx < n_att_elems).astype(jnp.float32)
    bce_sum = jnp.sum(bce_elem * valid_elems)

    acc_ref[0] += focal_sum
    acc_ref[1] += bce_sum

    # ---- finalize: divide once, write scalars -------------------------------
    @pl.when(i == pl.num_programs(0) - 1)
    def _():
        ce = acc_ref[0] * jnp.float32(1.0 / float(n_rows))
        bce = acc_ref[1] * jnp.float32(1.0 / float(n_att_elems))
        ce_ref[0, 0] = ce
        bce_ref[0, 0] = bce
        loss_ref[0, 0] = ce + bce


def asd_loss(out_classes, labels, out_atts, one_hots, alpha, *, max_tile_n=512):
    """Pallas implementation of ASDLoss.forward.

    out_classes: (N, C) logits (any float dtype; cast in-kernel)
    labels:      (N,)   int class indices
    out_atts:    (N, A) logits
    one_hots:    (N, A) multi-label targets
    alpha:       (C, 1) per-class focal weights (torch convention)
    Returns (loss, ce_loss, bce_loss) as f32 scalars.
    """
    N, C = out_classes.shape
    _, A = out_atts.shape

    labels2d = labels.astype(jnp.int32).reshape(N, 1)       # (N, 1)
    alpha_row = alpha.astype(jnp.float32).reshape(1, C)     # (1, C) -- tiny, cast is free

    # ---- batch tiling ------------------------------------------------------
    tile_n = min(max_tile_n, _round_up(N, 8))               # multiple of 8 sublanes
    n_pad = pl.cdiv(N, tile_n) * tile_n
    grid = (n_pad // tile_n,)

    if n_pad != N:
        pad = n_pad - N
        out_classes = jnp.pad(out_classes, ((0, pad), (0, 0)))
        labels2d = jnp.pad(labels2d, ((0, pad), (0, 0)))
        out_atts = jnp.pad(out_atts, ((0, pad), (0, 0)))
        one_hots = jnp.pad(one_hots, ((0, pad), (0, 0)))

    # ---- lane-densify the BCE operands when the per-tile chunk aligns to vregs
    elems_per_tile = tile_n * A
    rows_per_tile = elems_per_tile // 128
    flat_ok = (elems_per_tile % 128 == 0) and (rows_per_tile % 8 == 0 or grid[0] == 1)
    if flat_ok:
        atts_in = out_atts.reshape(n_pad * A // 128, 128)
        oh_in = one_hots.reshape(n_pad * A // 128, 128)
        bce_block = (rows_per_tile, 128)
    else:
        atts_in = out_atts
        oh_in = one_hots
        bce_block = (tile_n, A)

    kernel = functools.partial(
        _asd_loss_kernel, n_rows=N, n_att_elems=N * A, tile_n=tile_n)

    scalar_out = jax.ShapeDtypeStruct((1, 1), jnp.float32)
    smem_out = pl.BlockSpec((1, 1), lambda i: (0, 0),
                            memory_space=pltpu.MemorySpace.SMEM)

    in_bytes = (out_classes.size * out_classes.dtype.itemsize
                + atts_in.size * atts_in.dtype.itemsize
                + oh_in.size * oh_in.dtype.itemsize
                + labels2d.size * 4 + alpha_row.size * 4)
    cost = pl.CostEstimate(
        flops=8 * N * C + 8 * N * A,
        transcendentals=N * C + 2 * N + 2 * N * A,
        bytes_accessed=in_bytes + 12,
    )

    loss, ce, bce = pl.pallas_call(
        kernel,
        out_shape=(scalar_out, scalar_out, scalar_out),
        grid_spec=pltpu.PrefetchScalarGridSpec(
            num_scalar_prefetch=0,
            grid=grid,
            in_specs=[
                pl.BlockSpec((tile_n, C), lambda i: (i, 0)),   # class logits
                pl.BlockSpec((tile_n, 1), lambda i: (i, 0)),   # labels
                pl.BlockSpec((1, C), lambda i: (0, 0)),        # alpha (tiny, resident)
                pl.BlockSpec(bce_block, lambda i: (i, 0)),     # attribute logits
                pl.BlockSpec(bce_block, lambda i: (i, 0)),     # one-hot targets
            ],
            out_specs=(smem_out, smem_out, smem_out),
            scratch_shapes=[pltpu.SMEM((2,), jnp.float32)],    # [focal_sum, bce_sum]
        ),
        compiler_params=pltpu.CompilerParams(
            dimension_semantics=("arbitrary",),     # carries the accumulator
            vmem_limit_bytes=32 * 1024 * 1024,      # explicit: >v5e default, fits v7x
        ),
        cost_estimate=cost,
    )(out_classes, labels2d, alpha_row, atts_in, oh_in)

    return loss[0, 0], ce[0, 0], bce[0, 0]


def asd_loss_ref(out_classes, labels, out_atts, one_hots, alpha):
    """Pure-JAX reference (mirrors the PyTorch forward)."""
    out_classes = out_classes.astype(jnp.float32)
    out_atts = out_atts.astype(jnp.float32)
    one_hots = one_hots.astype(jnp.float32)
    p = jax.nn.softmax(out_classes, axis=1)
    mask = jax.nn.one_hot(labels, out_classes.shape[1], dtype=jnp.float32)
    probs = jnp.sum(p * mask, axis=1, keepdims=True)
    log_p = jnp.log(probs)
    a = alpha.reshape(-1)[labels].reshape(-1, 1)
    batch_loss = -a * (1.0 - probs) ** FOCAL_GAMMA * log_p
    ce = jnp.mean(batch_loss)
    x, y = out_atts, one_hots
    bce = jnp.mean(jnp.maximum(x, 0.0) - x * y + jnp.log1p(jnp.exp(-jnp.abs(x))))
    return ce + bce, ce, bce


if __name__ == "__main__":
    key = jax.random.PRNGKey(0)
    N, C, A = 8, 4, 16   # batch, num_classes, num_attributes

    k1, k2, k3, k4 = jax.random.split(key, 4)
    out_classes = jax.random.normal(k1, (N, C), dtype=jnp.float32)
    labels = jax.random.randint(k2, (N,), 0, C, dtype=jnp.int32)
    out_atts = jax.random.normal(k3, (N, A), dtype=jnp.float32)
    one_hots = (jax.random.uniform(k4, (N, A)) > 0.5).astype(jnp.float32)

    # Deterministic parameter init: alpha passed to ASDLoss as a (C, 1) tensor,
    # samples_per_cls=None (so class_balanced_alpha is skipped).
    alpha = (1.0 + 0.1 * jnp.arange(C, dtype=jnp.float32)).reshape(C, 1)

    loss, ce, bce = asd_loss(out_classes, labels, out_atts, one_hots, alpha)
    jax.block_until_ready((loss, ce, bce))

    # sanity check against pure-JAX reference
    loss_r, ce_r, bce_r = asd_loss_ref(out_classes, labels, out_atts, one_hots, alpha)
    assert abs(float(loss) - float(loss_r)) < 1e-5, (float(loss), float(loss_r))
    assert abs(float(ce) - float(ce_r)) < 1e-5, (float(ce), float(ce_r))
    assert abs(float(bce) - float(bce_r)) < 1e-5, (float(bce), float(bce_r))

    # also exercise a ragged batch (non-multiple of tile) to hit the masking path
    N2 = 13
    k5, k6, k7, k8 = jax.random.split(jax.random.PRNGKey(1), 4)
    oc2 = jax.random.normal(k5, (N2, C), dtype=jnp.float32)
    lb2 = jax.random.randint(k6, (N2,), 0, C, dtype=jnp.int32)
    oa2 = jax.random.normal(k7, (N2, A), dtype=jnp.float32)
    oh2 = (jax.random.uniform(k8, (N2, A)) > 0.5).astype(jnp.float32)
    l2, c2, b2 = asd_loss(oc2, lb2, oa2, oh2, alpha)
    jax.block_until_ready((l2, c2, b2))
    l2r, c2r, b2r = asd_loss_ref(oc2, lb2, oa2, oh2, alpha)
    assert abs(float(l2) - float(l2r)) < 1e-5, (float(l2), float(l2r))
    assert abs(float(c2) - float(c2r)) < 1e-5, (float(c2), float(c2r))
    assert abs(float(b2) - float(b2r)) < 1e-5, (float(b2), float(b2r))

    print("KERNEL_OK")
</pallas_src>

<mosaic_0001>
module attributes {stable_mosaic.version = 11 : i64} {
  func.func @_asd_loss_kernel(%arg0: i32, %arg1: memref<8x4xf32, #tpu.memory_space<vmem>>, %arg2: memref<8x1xi32, #tpu.memory_space<vmem>>, %arg3: memref<1x4xf32, #tpu.memory_space<vmem>>, %arg4: memref<1x128xf32, #tpu.memory_space<vmem>>, %arg5: memref<1x128xf32, #tpu.memory_space<vmem>>, %arg6: memref<1x1xf32, #tpu.memory_space<smem>>, %arg7: memref<1x1xf32, #tpu.memory_space<smem>>, %arg8: memref<1x1xf32, #tpu.memory_space<smem>>, %arg9: memref<2xf32, #tpu.memory_space<smem>>) attributes {dimension_semantics = [#tpu.dimension_semantics<arbitrary>], iteration_bounds = array<i64: 1>, scalar_prefetch = 0 : i64, scratch_operands = 1 : i64, tpu.core_type = #tpu.core_type<tc>, window_params = [{transform_indices = @transform_0, window_bounds = array<i64: 8, 4>}, {transform_indices = @transform_1, window_bounds = array<i64: 8, 1>}, {pipeline_mode = #tpu.pipeline_mode<synchronous>, transform_indices = @transform_2, window_bounds = array<i64: 1, 4>}, {transform_indices = @transform_3, window_bounds = array<i64: 1, 128>}, {transform_indices = @transform_4, window_bounds = array<i64: 1, 128>}, {transform_indices = @transform_5, window_bounds = array<i64: 1, 1>}, {transform_indices = @transform_6, window_bounds = array<i64: 1, 1>}, {transform_indices = @transform_7, window_bounds = array<i64: 1, 1>}]} {
    %c0_i32 = arith.constant 0 : i32
    %0 = arith.cmpi eq, %arg0, %c0_i32 : i32
    %1 = arith.extui %0 : i1 to i32
    %c0_i32_0 = arith.constant 0 : i32
    %2 = arith.cmpi ne, %1, %c0_i32_0 : i32
    scf.if %2 {
      %cst_27 = arith.constant 0.000000e+00 : f32
      %c0_28 = arith.constant 0 : index
      %87 = memref.load %arg9[%c0_28] : memref<2xf32, #tpu.memory_space<smem>>
      memref.store %cst_27, %arg9[%c0_28] : memref<2xf32, #tpu.memory_space<smem>>
      %cst_29 = arith.constant 0.000000e+00 : f32
      %c1_30 = arith.constant 1 : index
      %88 = memref.load %arg9[%c1_30] : memref<2xf32, #tpu.memory_space<smem>>
      memref.store %cst_29, %arg9[%c1_30] : memref<2xf32, #tpu.memory_space<smem>>
    } else {
    }
    %c0 = arith.constant 0 : index
    %c0_1 = arith.constant 0 : index
    %3 = vector.load %arg1[%c0, %c0_1] : memref<8x4xf32, #tpu.memory_space<vmem>>, vector<8x4xf32>
    %c0_2 = arith.constant 0 : index
    %c0_3 = arith.constant 0 : index
    %4 = vector.load %arg2[%c0_2, %c0_3] : memref<8x1xi32, #tpu.memory_space<vmem>>, vector<8x1xi32>
    %c0_4 = arith.constant 0 : index
    %c0_5 = arith.constant 0 : index
    %5 = vector.load %arg3[%c0_4, %c0_5] : memref<1x4xf32, #tpu.memory_space<vmem>>, vector<1x4xf32>
    %cst = arith.constant dense<0xFF800000> : vector<8xf32>
    %6 = vector.multi_reduction <maximumf>, %3, %cst [1] : vector<8x4xf32> to vector<8xf32>
    %7 = vector.shape_cast %6 : vector<8xf32> to vector<8x1xf32>
    %8 = vector.broadcast %7 : vector<8x1xf32> to vector<8x4xf32>
    %9 = arith.subf %3, %8 : vector<8x4xf32>
    %10 = math.exp %9 : vector<8x4xf32>
    %cst_6 = arith.constant dense<0.000000e+00> : vector<8xf32>
    %11 = vector.multi_reduction <add>, %10, %cst_6 [1] : vector<8x4xf32> to vector<8xf32>
    %12 = vector.shape_cast %11 : vector<8xf32> to vector<8x1xf32>
    %13 = math.log %12 : vector<8x1xf32>
    %14 = vector.broadcast %13 : vector<8x1xf32> to vector<8x4xf32>
    %15 = arith.subf %9, %14 : vector<8x4xf32>
    %16 = tpu.iota {dimensions = array<i32: 1>} : vector<8x4xi32>
    %17 = vector.broadcast %4 : vector<8x1xi32> to vector<8x4xi32>
    %18 = arith.cmpi eq, %16, %17 : vector<8x4xi32>
    %19 = arith.extui %18 : vector<8x4xi1> to vector<8x4xi32>
    %20 = arith.sitofp %19 : vector<8x4xi32> to vector<8x4xf32>
    %21 = arith.mulf %15, %20 : vector<8x4xf32>
    %cst_7 = arith.constant dense<0.000000e+00> : vector<8xf32>
    %22 = vector.multi_reduction <add>, %21, %cst_7 [1] : vector<8x4xf32> to vector<8xf32>
    %23 = vector.shape_cast %22 : vector<8xf32> to vector<8x1xf32>
    %24 = math.exp %23 : vector<8x1xf32>
    %25 = vector.broadcast %5 : vector<1x4xf32> to vector<8x4xf32>
    %26 = arith.mulf %20, %25 : vector<8x4xf32>
    %cst_8 = arith.constant dense<0.000000e+00> : vector<8xf32>
    %27 = vector.multi_reduction <add>, %26, %cst_8 [1] : vector<8x4xf32> to vector<8xf32>
    %28 = vector.shape_cast %27 : vector<8xf32> to vector<8x1xf32>
    %cst_9 = arith.constant 1.000000e+00 : f32
    %29 = vector.broadcast %cst_9 : f32 to vector<8x1xf32>
    %30 = arith.subf %29, %24 : vector<8x1xf32>
    %cst_10 = arith.constant 0.000000e+00 : f32
    %31 = vector.broadcast %cst_10 : f32 to vector<8x1xf32>
    %32 = arith.subf %31, %28 : vector<8x1xf32>
    %33 = arith.mulf %30, %30 : vector<8x1xf32>
    %34 = arith.mulf %32, %33 : vector<8x1xf32>
    %35 = arith.mulf %34, %23 : vector<8x1xf32>
    %c8_i32 = arith.constant 8 : i32
    %36 = arith.muli %arg0, %c8_i32 : i32
    %37 = tpu.iota {dimensions = array<i32: 0>} : vector<8x1xi32>
    %38 = vector.broadcast %36 : i32 to vector<8x1xi32>
    %39 = arith.addi %38, %37 : vector<8x1xi32>
    %c8_i32_11 = arith.constant 8 : i32
    %40 = vector.broadcast %c8_i32_11 : i32 to vector<8x1xi32>
    %41 = arith.cmpi slt, %39, %40 : vector<8x1xi32>
    %42 = arith.extui %41 : vector<8x1xi1> to vector<8x1xi32>
    %43 = arith.sitofp %42 : vector<8x1xi32> to vector<8x1xf32>
    %44 = arith.mulf %35, %43 : vector<8x1xf32>
    %45 = vector.shape_cast %44 : vector<8x1xf32> to vector<1x8x1xf32>
    %cst_12 = arith.constant dense<0.000000e+00> : vector<1xf32>
    %46 = vector.multi_reduction <add>, %45, %cst_12 [1, 2] : vector<1x8x1xf32> to vector<1xf32>
    %47 = vector.shape_cast %46 : vector<1xf32> to vector<1x1x1xf32>
    %48 = vector.extract %47[0, 0, 0] : f32 from vector<1x1x1xf32>
    %c0_13 = arith.constant 0 : index
    %c0_14 = arith.constant 0 : index
    %49 = vector.load %arg4[%c0_13, %c0_14] : memref<1x128xf32, #tpu.memory_space<vmem>>, vector<1x128xf32>
    %c0_15 = arith.constant 0 : index
    %c0_16 = arith.constant 0 : index
    %50 = vector.load %arg5[%c0_15, %c0_16] : memref<1x128xf32, #tpu.memory_space<vmem>>, vector<1x128xf32>
    %cst_17 = arith.constant 0.000000e+00 : f32
    %51 = vector.broadcast %cst_17 : f32 to vector<1x128xf32>
    %52 = arith.maximumf %49, %51 : vector<1x128xf32>
    %53 = arith.mulf %49, %50 : vector<1x128xf32>
    %54 = arith.subf %52, %53 : vector<1x128xf32>
    %55 = math.absf %49 : vector<1x128xf32>
    %cst_18 = arith.constant 0.000000e+00 : f32
    %56 = vector.broadcast %cst_18 : f32 to vector<1x128xf32>
    %57 = arith.subf %56, %55 : vector<1x128xf32>
    %58 = math.exp %57 : vector<1x128xf32>
    %59 = math.log1p %58 : vector<1x128xf32>
    %60 = arith.addf %54, %59 : vector<1x128xf32>
    %61 = tpu.iota {dimensions = array<i32: 0>} : vector<1x128xi32>
    %62 = tpu.iota {dimensions = array<i32: 1>} : vector<1x128xi32>
    %c128_i32 = arith.constant 128 : i32
    %63 = arith.muli %arg0, %c128_i32 : i32
    %c128_i32_19 = arith.constant 128 : i32
    %64 = vector.broadcast %c128_i32_19 : i32 to vector<1x128xi32>
    %65 = arith.muli %61, %64 : vector<1x128xi32>
    %66 = vector.broadcast %63 : i32 to vector<1x128xi32>
    %67 = arith.addi %66, %65 : vector<1x128xi32>
    %68 = arith.addi %67, %62 : vector<1x128xi32>
    %c128_i32_20 = arith.constant 128 : i32
    %69 = vector.broadcast %c128_i32_20 : i32 to vector<1x128xi32>
    %70 = arith.cmpi slt, %68, %69 : vector<1x128xi32>
    %71 = arith.extui %70 : vector<1x128xi1> to vector<1x128xi32>
    %72 = arith.sitofp %71 : vector<1x128xi32> to vector<1x128xf32>
    %73 = arith.mulf %60, %72 : vector<1x128xf32>
    %74 = vector.shape_cast %73 : vector<1x128xf32> to vector<1x1x128xf32>
    %cst_21 = arith.constant dense<0.000000e+00> : vector<1xf32>
    %75 = vector.multi_reduction <add>, %74, %cst_21 [1, 2] : vector<1x1x128xf32> to vector<1xf32>
    %76 = vector.shape_cast %75 : vector<1xf32> to vector<1x1x1xf32>
    %77 = vector.extract %76[0, 0, 0] : f32 from vector<1x1x1xf32>
    %c0_22 = arith.constant 0 : index
    %78 = memref.load %arg9[%c0_22] : memref<2xf32, #tpu.memory_space<smem>>
    %79 = arith.addf %78, %48 : f32
    %c0_23 = arith.constant 0 : index
    %80 = memref.load %arg9[%c0_23] : memref<2xf32, #tpu.memory_space<smem>>
    memref.store %79, %arg9[%c0_23] : memref<2xf32, #tpu.memory_space<smem>>
    %c1 = arith.constant 1 : index
    %81 = memref.load %arg9[%c1] : memref<2xf32, #tpu.memory_space<smem>>
    %82 = arith.addf %81, %77 : f32
    %c1_24 = arith.constant 1 : index
    %83 = memref.load %arg9[%c1_24] : memref<2xf32, #tpu.memory_space<smem>>
    memref.store %82, %arg9[%c1_24] : memref<2xf32, #tpu.memory_space<smem>>
    %c0_i32_25 = arith.constant 0 : i32
    %84 = arith.cmpi eq, %arg0, %c0_i32_25 : i32
    %85 = arith.extui %84 : i1 to i32
    %c0_i32_26 = arith.constant 0 : i32
    %86 = arith.cmpi ne, %85, %c0_i32_26 : i32
    scf.if %86 {
      %c0_27 = arith.constant 0 : index
      %87 = memref.load %arg9[%c0_27] : memref<2xf32, #tpu.memory_space<smem>>
      %cst_28 = arith.constant 1.250000e-01 : f32
      %88 = arith.mulf %87, %cst_28 : f32
      %c1_29 = arith.constant 1 : index
      %89 = memref.load %arg9[%c1_29] : memref<2xf32, #tpu.memory_space<smem>>
      %cst_30 = arith.constant 7.812500e-03 : f32
      %90 = arith.mulf %89, %cst_30 : f32
      %c0_31 = arith.constant 0 : index
      %c0_32 = arith.constant 0 : index
      %91 = memref.load %arg7[%c0_31, %c0_32] : memref<1x1xf32, #tpu.memory_space<smem>>
      memref.store %88, %arg7[%c0_31, %c0_32] : memref<1x1xf32, #tpu.memory_space<smem>>
      %c0_33 = arith.constant 0 : index
      %c0_34 = arith.constant 0 : index
      %92 = memref.load %arg8[%c0_33, %c0_34] : memref<1x1xf32, #tpu.memory_space<smem>>
      memref.store %90, %arg8[%c0_33, %c0_34] : memref<1x1xf32, #tpu.memory_space<smem>>
      %93 = arith.addf %88, %90 : f32
      %c0_35 = arith.constant 0 : index
      %c0_36 = arith.constant 0 : index
      %94 = memref.load %arg6[%c0_35, %c0_36] : memref<1x1xf32, #tpu.memory_space<smem>>
      memref.store %93, %arg6[%c0_35, %c0_36] : memref<1x1xf32, #tpu.memory_space<smem>>
    } else {
    }
    return
  }
  func.func @transform_0(%arg0: i32) -> (i32, i32) {
    %c0_i32 = arith.constant 0 : i32
    %c0_i32_0 = arith.constant 0 : i32
    return %arg0, %c0_i32 : i32, i32
  }
  func.func @transform_1(%arg0: i32) -> (i32, i32) {
    %c0_i32 = arith.constant 0 : i32
    %c0_i32_0 = arith.constant 0 : i32
    return %arg0, %c0_i32 : i32, i32
  }
  func.func @transform_2(%arg0: i32) -> (i32, i32) {
    %c0_i32 = arith.constant 0 : i32
    %c0_i32_0 = arith.constant 0 : i32
    %c0_i32_1 = arith.constant 0 : i32
    return %c0_i32, %c0_i32_0 : i32, i32
  }
  func.func @transform_3(%arg0: i32) -> (i32, i32) {
    %c0_i32 = arith.constant 0 : i32
    %c0_i32_0 = arith.constant 0 : i32
    return %arg0, %c0_i32 : i32, i32
  }
  func.func @transform_4(%arg0: i32) -> (i32, i32) {
    %c0_i32 = arith.constant 0 : i32
    %c0_i32_0 = arith.constant 0 : i32
    return %arg0, %c0_i32 : i32, i32
  }
  func.func @transform_5(%arg0: i32) -> (i32, i32) {
    %c0_i32 = arith.constant 0 : i32
    %c0_i32_0 = arith.constant 0 : i32
    %c0_i32_1 = arith.constant 0 : i32
    return %c0_i32, %c0_i32_0 : i32, i32
  }
  func.func @transform_6(%arg0: i32) -> (i32, i32) {
    %c0_i32 = arith.constant 0 : i32
    %c0_i32_0 = arith.constant 0 : i32
    %c0_i32_1 = arith.constant 0 : i32
    return %c0_i32, %c0_i32_0 : i32, i32
  }
  func.func @transform_7(%arg0: i32) -> (i32, i32) {
    %c0_i32 = arith.constant 0 : i32
    %c0_i32_0 = arith.constant 0 : i32
    %c0_i32_1 = arith.constant 0 : i32
    return %c0_i32, %c0_i32_0 : i32, i32
  }
}

</mosaic_0001>

<bundles_post_ra>
// kernel: tpu_custom_call.1
= control target key start
LH: loop header
LB: loop body
LE: loop exit
PB: predicated region body
PF: predicated region fallthrough
CT: control target
= control target key end

     0   :  { %13 = vsyncpa [#allocation4], 0  ;;  %vm36_vm0 = vcmask 31744   ;;  %s337_s0 = inlined_call_operand.vmem [shape: f32[8,4], index: 0, kind: input, shape index: {}]   ;;  %s338_s1 = inlined_call_operand.vmem [shape: s32[8,1], index: 1, kind: input, shape index: {}]   ;;  %s339_s2 = inlined_call_operand.vmem [shape: f32[1,4], index: 2, kind: input, shape index: {}]   ;;  %s340_s3 = inlined_call_operand.vmem [shape: f32[1,128], index: 3, kind: input, shape index: {}]   ;;  %s341_s4 = inlined_call_operand.vmem [shape: f32[1,128], index: 4, kind: input, shape index: {}]   ;;  %s342_s5 = inlined_call_operand.hbm [shape: f32[1,1], index: 5, kind: output, shape index: {0}]   ;;  %s343_s6 = inlined_call_operand.hbm [shape: f32[1,1], index: 6, kind: output, shape index: {1}]   ;;  %s344_s7 = inlined_call_operand.hbm [shape: f32[1,1], index: 7, kind: output, shape index: {2}]  }
   0x1   :  { %v33_v0 = vld [vmem:[%s337_s0] sm:$0xff] }
   0x2   :  { %14 = vsyncpa [#allocation6], 0  ;;  %v37_v1 = vsel %vm36_vm0, %v33_v0, -inf  ;;  %v34_v2 = vld [vmem:[%s338_s1] sm:$0xff]  ;;  %v264_v3 = vmov 0   ;;  %v49_v9 = vlaneseq  ;;  %v265_v14 = vmov 0.0  }
   0x3   :  { %38 = vmax.xlane.f32.xlu0 %v37_v1  ;;  %211 = vset.pattern.permute.xlu1 %v264_v3  ;;  %v213_v13 = vld [vmem:[%s339_s2] ss:$0 sm:$0xff]  ;;  %vm123_vm4 = vcmask 1040384   ;;  %vm84_vm5 = vcmask 7168   ;;  %s170_s8 = sshll.u32 %s343_s6, 4  ;;  %s161_s11 = sshll.u32 %s342_s5, 4  ;;  %s171_s8 = int_to_ptr.hbm [resolvable:$true] %s170_s8  ;;  %s162_s11 = int_to_ptr.hbm [resolvable:$true] %s161_s11 }
   0x4   :  { %212 = vset.pattern.permute.xlu0 %v264_v3  ;;  %52 = vperm.xlu1 %211, %v34_v2   ;;  %v50_v10 = vand.u32 127, %v49_v9  ;;  %v77_v12 = vshrl.u32 %v49_v9, 7  ;;  %v95_v26 = vld [vmem:[%s340_s3] sm:$0x1]  ;;  %s179_s18 = sshll.u32 %s344_s7, 4  ;;  %s266_s20 = smov [#allocation5]   ;;  %s180_s18 = int_to_ptr.hbm [resolvable:$true] %s179_s18 }
   0x5   :  { %v100_v27 = vand.u32 2147483647, %v95_v26  ;;  %v96_v33 = vld [vmem:[%s341_s4] sm:$0x1]  ;;  %v97_v36 = vmax.f32 %v95_v26, 0.0  ;;  %s267_s6 = smov [#allocation3]  }
   0x6   :  { %v115_v16 = vmul.u32 128, %v77_v12  ;;  %v98_v37 = vmul.f32 %v96_v33, %v95_v26  ;;  %s268_s5 = smov [#allocation7]  }
   0x7   :  { %v101_v28 = vsub.f32 0.0, %v100_v27 }
   0x8   :  { %v118_v18 = vadd.s32 %v115_v16, %v50_v10  ;;  %v99_v41 = vsub.f32 %v97_v36, %v98_v37 }
   0x9   :  { %v102_v29 = vmul.f32 1.442695, %v101_v28 }
   0xa   :  { %vm119_vm3 = vcmp.lt.s32.totalorder %v118_v18, 128 }
   0xb   :  { %v199_v44 = vsel %vm119_vm3, 1.0, %v265_v14 }
  0x76   :  { %v39_v4 = vpop.xlane.xlu0 %38  ;;  %v53_v11 = vpop.permute.xlu1 %52 }
  0x77   :  { %v40_v5 = vsub.f32 %v33_v0, %v39_v4  ;;  %vm54_vm1 = vcmp.eq.s32.totalorder %v50_v10, %v53_v11 }
  0x78   :  { %v198_v15 = vsel %vm54_vm1, 1.0, %v265_v14 }
  0x79   :  { %v41_v6 = vmul.f32 1.442695, %v40_v5  ;;  %v66_v17 = vmul.f32 %v213_v13, %v198_v15 }
  0x7b   :  { %214 = vpow2.f32 %v41_v6  ;;  %v67_v19 = vsel %vm36_vm0, %v66_v17, 0.0 }
  0x7c   :  { %68 = vadd.xlane.f32.xlu2 %v67_v19 }
  0x81   :  { %v215_v7 = vpop.eup %214 }
  0x82   :  { %v43_v8 = vsel %vm36_vm0, %v215_v7, 0.0 }
  0x83   :  { %44 = vadd.xlane.f32.xlu0 %v43_v8 }
  0xef   :  { %v69_v50 = vpop.xlane.xlu2 %68 }
  0xf0   :  { %v71_v52 = vsub.f32 0.0, %v69_v50 }
  0xf6   :  { %v45_v20 = vpop.xlane.xlu0 %44 }
  0xf7   :  { %216 = vlog2.f32 %v45_v20 }
  0xf8   :  { %218 = vpow2.f32 %v102_v29 }
  0xfd   :  { %v217_v21 = vpop.eup %216 }
  0xfe   :  { %v47_v22 = vmul.f32 0.6931472, %v217_v21  ;;  %v219_v30 = vpop.eup %218 }
  0xff   :  { %v104_v31 = vadd.f32 1.0, %v219_v30  ;;  %v107_v32 = vmul.f32 -0.5, %v219_v30  ;;  %v110_v38 = vand.u32 2147483647, %v219_v30 }
 0x100   :  { %v48_v23 = vsub.f32 %v40_v5, %v47_v22 }
 0x101   :  { %220 = vlog2.f32 %v104_v31  ;;  %v108_v34 = vadd.f32 1.0, %v107_v32  ;;  %vm111_vm2 = vcmp.lt.f32.partialorder %v110_v38, 0.0004427343 }
 0x102   :  { %v57_v24 = vmul.f32 %v198_v15, %v48_v23 }
 0x103   :  { %v109_v40 = vmul.f32 %v219_v30, %v108_v34 }
 0x104   :  { %v58_v25 = vsel %vm36_vm0, %v57_v24, 0.0 }
 0x105   :  { %59 = vadd.xlane.f32.xlu1 %v58_v25 }
 0x107   :  { %v221_v35 = vpop.eup %220 }
 0x108   :  { %v106_v39 = vmul.f32 0.6931472, %v221_v35 }
 0x10a   :  { %v112_v42 = vsel %vm111_vm2, %v109_v40, %v106_v39 }
 0x10b   :  { %v113_v43 = vadd.f32 %v112_v42, %v99_v41 }
 0x10d   :  { %v122_v45 = vmul.f32 %v199_v44, %v113_v43 }
 0x10f   :  { %v124_v46 = vsel %vm123_vm4, %v122_v45, 0.0 }
 0x110   :  { %125 = vadd.xlane.f32.xlu0 %v124_v46 }
 0x178   :  { %v60_v47 = vpop.xlane.xlu1 %59 }
 0x179   :  { %v61_v48 = vmul.f32 1.442695, %v60_v47 }
 0x17b   :  { %222 = vpow2.f32 %v61_v48 }
 0x181   :  { %v223_v49 = vpop.eup %222 }
 0x182   :  { %v70_v51 = vsub.f32 1.0, %v223_v49 }
 0x183   :  { %v126_v57 = vpop.xlane.xlu0 %125 }
 0x184   :  { %v72_v53 = vmul.f32 %v70_v51, %v70_v51  ;;  %v127_v58 = vrot.slane %v126_v57, 4 }
 0x186   :  { %v73_v54 = vmul.f32 %v72_v53, %v71_v52  ;;  %v128_v59 = vadd.f32 %v127_v58, %v126_v57 }
 0x188   :  { %v74_v55 = vmul.f32 %v73_v54, %v60_v47  ;;  %v129_v60 = vrot.slane %v128_v59, 2 }
 0x18a   :  { %v85_v56 = vsel %vm84_vm5, %v74_v55, 0.0  ;;  %v130_v0 = vadd.f32 %v129_v60, %v128_v59 }
 0x18b   :  { %86 = vadd.xlane.f32.xlu2 %v85_v56 }
 0x18c   :  { %v131_v3 = vrot.slane %v130_v0, 1 }
 0x18e   :  { %v132_v6 = vadd.f32 %v131_v3, %v130_v0 }
 0x1fe   :  { %v87_v61 = vpop.xlane.xlu2 %86 }
 0x1ff   :  { %v88_v62 = vrot.slane %v87_v61, 4 }
 0x201   :  { %v89_v63 = vadd.f32 %v88_v62, %v87_v61 }
 0x203   :  { %v90_v1 = vrot.slane %v89_v63, 2 }
 0x205   :  { %v91_v2 = vadd.f32 %v90_v1, %v89_v63 }
 0x207   :  { %v92_v4 = vrot.slane %v91_v2, 1 }
 0x209   :  { %v93_v5 = vadd.f32 %v92_v4, %v91_v2 }
 0x20b   :  { %202 = vpush %v93_v5 }
 0x20c   :  { %204 = vpush %v132_v6 }
 0x23c   :  { %s203_s12 = spop %202 }
 0x23d   :  { %s146_s13 = smul.f32 0.125, %s203_s12  ;;  %s205_s14 = spop %204 }
 0x23e   :  { %s148_s15 = smul.f32 0.0078125, %s205_s14 }
 0x23f   :  { %150 = sst [smem:[#allocation5]] %s146_s13 }
 0x240   :  { %152 = sst [smem:[#allocation7]] %s148_s15 }
 0x241   :  { %s153_s19 = sadd.f32 %s148_s15, %s146_s13 }
 0x242   :  { %173 = dma.smem_to_hbm %s266_s20, 16, %s171_s8, [#allocation6]  }
 0x243   :  { %155 = sst [smem:[#allocation3]] %s153_s19 }
 0x244   :  { %164 = dma.smem_to_hbm %s267_s6, 16, %s162_s11, [#allocation4]  }
 0x245   :  { %182 = dma.smem_to_hbm %s268_s5, 16, %s180_s18, [#allocation6]  }
 0x246   :  { %260 = dma.done.wait [#allocation4], 16  }
 0x247   :  { %261 = vsyncadd [#allocation4], 4294967280 }
 0x248   :  { %262 = dma.done.wait [#allocation6], 32  }
 0x249   :  { %263 = vsyncadd [#allocation6], 4294967264 }
 0x24a   :  { %195 = sfence }
 0x24b   :  { %196 = vsyncpa [#allocation4], 1 }
 0x24c   :  { %197 = vsyncpa [#allocation6], 1 }

</bundles_post_ra>
